<compile_context>
chip_gen: v6e
topology: v6e:2x2x1
jax: 0.10.0
libtpu: 0.0.40
codegen_flags: <defaults>
</compile_context>

<pallas_src>
import functools

import jax
import jax.numpy as jnp
from jax.experimental import pallas as pl
from jax.experimental.pallas import tpu as pltpu


def _round_up(n: int, m: int) -> int:
    return ((n + m - 1) // m) * m


def _fused_mlp_bn_kernel(x_hbm_ref, w_ref, gb_ref, o_ref, *,
                         num_layers: int, inv_batch: float, eps: float,
                         compute_dtype):
    """Grid axis 0 = layer index (sequential).

    o_ref (constant output index_map) is the resident activation: it stays in
    VMEM across all layer steps and is written back to HBM once at the end.
    """
    l = pl.program_id(0)

    # Layer 0: DMA the padded f32 network input straight into the resident
    # activation/output block.  x lives in HBM (memory_space=pl.ANY), so it
    # never occupies a double-buffered pipeline slot.
    @pl.when(l == 0)
    def _():
        pltpu.sync_copy(x_hbm_ref, o_ref)

    a = o_ref[...]                                      # (B, D) f32 activation
    w = w_ref[...]                                      # (D, D) f32 or bf16

    # MXU matmul, f32 accumulation.  Linear bias intentionally dropped:
    # training-mode BN subtracts the batch mean, cancelling it exactly.
    y = jnp.dot(a.astype(compute_dtype), w,
                preferred_element_type=jnp.float32)     # (B, D) f32

    gb = gb_ref[l]                                      # (2, D): [gamma; beta]
    gamma = gb[0:1, :]                                  # (1, D)
    beta = gb[1:2, :]                                   # (1, D)

    # BatchNorm1d training-mode stats, two-pass (numerically robust).
    mean = jnp.sum(y, axis=0, keepdims=True) * inv_batch        # (1, D)
    d = y - mean                                                # (B, D)
    var = jnp.sum(d * d, axis=0, keepdims=True) * inv_batch     # biased var
    scale = gamma * jax.lax.rsqrt(var + eps)                    # (1, D), EUP
    out = d * scale + beta                                      # (B, D)

    # ReLU on every layer except the last; result stays resident for the next
    # layer and is the final output on the last step (o_ref dtype == f32).
    @pl.when(l < num_layers - 1)
    def _():
        o_ref[...] = jnp.maximum(out, 0.0)

    @pl.when(l == num_layers - 1)
    def _():
        o_ref[...] = out


def mlp_bn_forward(x, params, *, eps: float = 1e-5, use_bf16_matmul: bool = False):
    """x: (B, input_dim); params: list of (w, b, gamma, beta) per layer."""
    B = x.shape[0]
    L = len(params)

    # Common padded feature width: every layer dim rounded up to 128 lanes.
    dims = [params[0][0].shape[0]] + [w.shape[1] for (w, _b, _g, _bt) in params]
    D = max(_round_up(d, 128) for d in dims)
    out_dim = params[-1][0].shape[1]

    w_dtype = jnp.bfloat16 if use_bf16_matmul else jnp.float32
    compute_dtype = jnp.bfloat16 if use_bf16_matmul else jnp.float32

    # Stacked, zero-padded weights (streamed one layer per grid step) and
    # gamma/beta packed into a single small resident (L, 2, D) array.
    w_stk = jnp.zeros((L, D, D), w_dtype)
    gb_stk = jnp.zeros((L, 2, D), jnp.float32)
    for i, (w, _b, g, bt) in enumerate(params):
        n_in, n_out = w.shape
        w_stk = w_stk.at[i, :n_in, :n_out].set(w.astype(w_dtype))
        gb_stk = gb_stk.at[i, 0, :n_out].set(g.reshape(n_out).astype(jnp.float32))
        gb_stk = gb_stk.at[i, 1, :n_out].set(bt.reshape(n_out).astype(jnp.float32))

    x_pad = jnp.zeros((B, D), jnp.float32).at[:, :x.shape[1]].set(
        x.astype(jnp.float32))

    kernel = functools.partial(
        _fused_mlp_bn_kernel,
        num_layers=L, inv_batch=1.0 / B, eps=eps, compute_dtype=compute_dtype)

    # Generation-aware VMEM budget: double-buffered weight block + resident
    # output/activation + gamma/beta, with headroom below physical capacity.
    w_bytes = 2 if use_bf16_matmul else 4
    need = (2 * D * D * w_bytes          # W[l], double-buffered
            + 2 * B * D * 4              # output / resident activation
            + 2 * L * 2 * D * 4          # gamma/beta (resident, tiny)
            + (2 << 20))                 # compiler-internal headroom
    try:
        vmem_cap = pltpu.get_tpu_info().vmem_capacity_bytes
    except Exception:
        vmem_cap = 64 << 20
    vmem_limit = max(8 << 20, min(need, int(vmem_cap * 0.85)))

    out_pad = pl.pallas_call(
        kernel,
        out_shape=jax.ShapeDtypeStruct((B, D), jnp.float32),
        grid_spec=pltpu.PrefetchScalarGridSpec(
            num_scalar_prefetch=0,
            grid=(L,),
            in_specs=[
                pl.BlockSpec(memory_space=pl.ANY),                         # x (raw HBM)
                pl.BlockSpec((pl.Squeezed(), D, D), lambda l: (l, 0, 0)),  # W[l]
                pl.BlockSpec((L, 2, D), lambda l: (0, 0, 0)),              # gamma/beta
            ],
            out_specs=pl.BlockSpec((B, D), lambda l: (0, 0)),
        ),
        compiler_params=pltpu.CompilerParams(
            dimension_semantics=("arbitrary",),    # layers are sequential
            vmem_limit_bytes=vmem_limit),
    )(x_pad, w_stk, gb_stk)

    return out_pad[:, :out_dim].astype(x.dtype)


def init_mlp_bn_params(key, input_dim, hidden_dim, output_dim, num_layers):
    """Deterministic synthetic params matching nn.Linear + nn.BatchNorm1d shapes."""
    h = [hidden_dim] * (num_layers - 1)
    dims = list(zip([input_dim] + h, h + [output_dim]))
    params = []
    for (n_in, n_out) in dims:
        key, kw, kb = jax.random.split(key, 3)
        bound = 1.0 / (n_in ** 0.5)
        w = jax.random.uniform(kw, (n_in, n_out), jnp.float32, -bound, bound)
        b = jax.random.uniform(kb, (1, n_out), jnp.float32, -bound, bound)
        gamma = jnp.ones((1, n_out), jnp.float32)   # BatchNorm1d weight init
        beta = jnp.zeros((1, n_out), jnp.float32)   # BatchNorm1d bias init
        params.append((w, b, gamma, beta))
    return params


def _reference_forward(x, params, eps=1e-5):
    """Pure-JAX reference (keeps the Linear bias; training-mode BN cancels it)."""
    num_layers = len(params)
    for i, (w, b, gamma, beta) in enumerate(params):
        y = x @ w + b
        mean = jnp.mean(y, axis=0, keepdims=True)
        var = jnp.mean((y - mean) ** 2, axis=0, keepdims=True)
        y = gamma * (y - mean) / jnp.sqrt(var + eps) + beta
        if i < num_layers - 1:
            y = jnp.maximum(y, 0.0)
        x = y
    return x


if __name__ == "__main__":
    key = jax.random.PRNGKey(0)
    k_x, k_p = jax.random.split(key)

    batch, input_dim, hidden_dim, output_dim, num_layers = 8, 16, 32, 4, 3
    x = jax.random.normal(k_x, (batch, input_dim), jnp.float32)
    params = init_mlp_bn_params(k_p, input_dim, hidden_dim, output_dim, num_layers)

    ref = _reference_forward(x, params)

    # f32-weight path: exact vs. the two-pass f32 reference.
    out = jax.jit(mlp_bn_forward)(x, params)
    out = jax.block_until_ready(out)
    assert out.shape == (batch, output_dim)
    assert jnp.allclose(out, ref, atol=1e-4, rtol=1e-4), "f32 mismatch vs reference"

    # bf16-weight path (halves streamed weight bytes); looser tolerance.
    out_bf16 = jax.jit(functools.partial(mlp_bn_forward, use_bf16_matmul=True))(
        x, params)
    out_bf16 = jax.block_until_ready(out_bf16)
    assert out_bf16.shape == (batch, output_dim)
    assert jnp.allclose(out_bf16, ref, atol=1e-1, rtol=1e-1), "bf16 mismatch vs reference"

    print("KERNEL_OK")
</pallas_src>

<mosaic_0001>
module attributes {stable_mosaic.version = 11 : i64} {
  func.func @_fused_mlp_bn_kernel(%arg0: i32, %arg1: memref<8x128xf32, #tpu.memory_space<any>>, %arg2: memref<1x128x128xf32, #tpu.memory_space<vmem>>, %arg3: memref<3x2x128xf32, #tpu.memory_space<vmem>>, %arg4: memref<8x128xf32, #tpu.memory_space<vmem>>) attributes {dimension_semantics = [#tpu.dimension_semantics<arbitrary>], iteration_bounds = array<i64: 3>, scalar_prefetch = 0 : i64, scratch_operands = 0 : i64, tpu.core_type = #tpu.core_type<tc>, window_params = [{}, {transform_indices = @transform_1, window_bounds = array<i64: 1, 128, 128>}, {pipeline_mode = #tpu.pipeline_mode<synchronous>, transform_indices = @transform_2, window_bounds = array<i64: 3, 2, 128>}, {pipeline_mode = #tpu.pipeline_mode<synchronous>, transform_indices = @transform_3, window_bounds = array<i64: 8, 128>}]} {
    %c0_i32 = arith.constant 0 : i32
    %0 = arith.cmpi eq, %arg0, %c0_i32 : i32
    %1 = arith.extui %0 : i1 to i32
    %c0_i32_0 = arith.constant 0 : i32
    %2 = arith.cmpi ne, %1, %c0_i32_0 : i32
    scf.if %2 {
      "tpu.region"() ({
        %37 = tpu.sem_alloc : memref<!tpu.dma_semaphore, #tpu.memory_space<semaphore_mem>>
        tpu.enqueue_dma source(%arg1 : memref<8x128xf32, #tpu.memory_space<any>>) target(%arg4 : memref<8x128xf32, #tpu.memory_space<vmem>>) target_semaphore(%37 : memref<!tpu.dma_semaphore, #tpu.memory_space<semaphore_mem>>)
        tpu.wait_dma2 semaphore(%37 : memref<!tpu.dma_semaphore, #tpu.memory_space<semaphore_mem>>) src(%arg1 : memref<8x128xf32, #tpu.memory_space<any>>) dst(%arg4 : memref<8x128xf32, #tpu.memory_space<vmem>>)
        tpu.yield
      }) : () -> ()
    } else {
    }
    %c0 = arith.constant 0 : index
    %c0_1 = arith.constant 0 : index
    %3 = vector.load %arg4[%c0, %c0_1] : memref<8x128xf32, #tpu.memory_space<vmem>>, vector<8x128xf32>
    %c0_2 = arith.constant 0 : index
    %c0_3 = arith.constant 0 : index
    %c0_4 = arith.constant 0 : index
    %4 = vector.load %arg2[%c0_2, %c0_3, %c0_4] : memref<1x128x128xf32, #tpu.memory_space<vmem>>, vector<1x128x128xf32>
    %5 = vector.shape_cast %4 : vector<1x128x128xf32> to vector<128x128xf32>
    %cst = arith.constant dense<0.000000e+00> : vector<8x128xf32>
    %6 = tpu.matmul %3, %5, %cst {dimension_numbers = #tpu.dot_dimension_numbers<[1], [0], [0], [1], [0, 0, 1, 1], [], []>} : vector<8x128xf32>, vector<128x128xf32>, vector<8x128xf32> -> vector<8x128xf32>
    %7 = arith.index_cast %arg0 : i32 to index
    %c0_5 = arith.constant 0 : index
    %c0_6 = arith.constant 0 : index
    %8 = vector.load %arg3[%7, %c0_5, %c0_6] : memref<3x2x128xf32, #tpu.memory_space<vmem>>, vector<1x2x128xf32>
    %9 = vector.shape_cast %8 : vector<1x2x128xf32> to vector<2x128xf32>
    %10 = vector.extract_strided_slice %9 {offsets = [0, 0], sizes = [1, 128], strides = [1, 1]} : vector<2x128xf32> to vector<1x128xf32>
    %11 = vector.extract_strided_slice %9 {offsets = [1, 0], sizes = [1, 128], strides = [1, 1]} : vector<2x128xf32> to vector<1x128xf32>
    %cst_7 = arith.constant dense<0.000000e+00> : vector<128xf32>
    %12 = vector.multi_reduction <add>, %6, %cst_7 [0] : vector<8x128xf32> to vector<128xf32>
    %13 = vector.shape_cast %12 : vector<128xf32> to vector<1x128xf32>
    %cst_8 = arith.constant 1.250000e-01 : f32
    %14 = vector.broadcast %cst_8 : f32 to vector<1x128xf32>
    %15 = arith.mulf %13, %14 : vector<1x128xf32>
    %16 = vector.broadcast %15 : vector<1x128xf32> to vector<8x128xf32>
    %17 = arith.subf %6, %16 : vector<8x128xf32>
    %18 = arith.mulf %17, %17 : vector<8x128xf32>
    %cst_9 = arith.constant dense<0.000000e+00> : vector<128xf32>
    %19 = vector.multi_reduction <add>, %18, %cst_9 [0] : vector<8x128xf32> to vector<128xf32>
    %20 = vector.shape_cast %19 : vector<128xf32> to vector<1x128xf32>
    %cst_10 = arith.constant 1.250000e-01 : f32
    %21 = vector.broadcast %cst_10 : f32 to vector<1x128xf32>
    %22 = arith.mulf %20, %21 : vector<1x128xf32>
    %cst_11 = arith.constant 9.99999974E-6 : f32
    %23 = vector.broadcast %cst_11 : f32 to vector<1x128xf32>
    %24 = arith.addf %22, %23 : vector<1x128xf32>
    %25 = math.rsqrt %24 : vector<1x128xf32>
    %26 = arith.mulf %10, %25 : vector<1x128xf32>
    %27 = vector.broadcast %26 : vector<1x128xf32> to vector<8x128xf32>
    %28 = arith.mulf %17, %27 : vector<8x128xf32>
    %29 = vector.broadcast %11 : vector<1x128xf32> to vector<8x128xf32>
    %30 = arith.addf %28, %29 : vector<8x128xf32>
    %c2_i32 = arith.constant 2 : i32
    %31 = arith.cmpi slt, %arg0, %c2_i32 : i32
    %32 = arith.extui %31 : i1 to i32
    %c0_i32_12 = arith.constant 0 : i32
    %33 = arith.cmpi ne, %32, %c0_i32_12 : i32
    scf.if %33 {
      %cst_15 = arith.constant 0.000000e+00 : f32
      %37 = vector.broadcast %cst_15 : f32 to vector<8x128xf32>
      %38 = arith.maximumf %30, %37 : vector<8x128xf32>
      %c0_16 = arith.constant 0 : index
      %c0_17 = arith.constant 0 : index
      %39 = vector.load %arg4[%c0_16, %c0_17] : memref<8x128xf32, #tpu.memory_space<vmem>>, vector<8x128xf32>
      tpu.vector_store %arg4[%c0_16, %c0_17], %38 {strides = array<i32>} : memref<8x128xf32, #tpu.memory_space<vmem>>, vector<8x128xf32>,
    } else {
    }
    %c2_i32_13 = arith.constant 2 : i32
    %34 = arith.cmpi eq, %arg0, %c2_i32_13 : i32
    %35 = arith.extui %34 : i1 to i32
    %c0_i32_14 = arith.constant 0 : i32
    %36 = arith.cmpi ne, %35, %c0_i32_14 : i32
    scf.if %36 {
      %c0_15 = arith.constant 0 : index
      %c0_16 = arith.constant 0 : index
      %37 = vector.load %arg4[%c0_15, %c0_16] : memref<8x128xf32, #tpu.memory_space<vmem>>, vector<8x128xf32>
      tpu.vector_store %arg4[%c0_15, %c0_16], %30 {strides = array<i32>} : memref<8x128xf32, #tpu.memory_space<vmem>>, vector<8x128xf32>,
    } else {
    }
    return
  }
  func.func @transform_1(%arg0: i32) -> (i32, i32, i32) {
    %c0_i32 = arith.constant 0 : i32
    %c0_i32_0 = arith.constant 0 : i32
    %c0_i32_1 = arith.constant 0 : i32
    return %arg0, %c0_i32, %c0_i32_0 : i32, i32, i32
  }
  func.func @transform_2(%arg0: i32) -> (i32, i32, i32) {
    %c0_i32 = arith.constant 0 : i32
    %c0_i32_0 = arith.constant 0 : i32
    %c0_i32_1 = arith.constant 0 : i32
    %c0_i32_2 = arith.constant 0 : i32
    return %c0_i32, %c0_i32_0, %c0_i32_1 : i32, i32, i32
  }
  func.func @transform_3(%arg0: i32) -> (i32, i32) {
    %c0_i32 = arith.constant 0 : i32
    %c0_i32_0 = arith.constant 0 : i32
    %c0_i32_1 = arith.constant 0 : i32
    return %c0_i32, %c0_i32_0 : i32, i32
  }
}

</mosaic_0001>

<bundles_post_ra>
// kernel: mlp_bn_forward.1
= control target key start
LH: loop header
LB: loop body
LE: loop exit
PB: predicated region body
PF: predicated region fallthrough
CT: control target
= control target key end

     0   :  { %s457_s12 = smov 0   ;;  %s515_s0 = inlined_call_operand.vmem [shape: f32[8,128], index: 0, kind: input, shape index: {}]   ;;  %s516_s1 = inlined_call_operand.vmem [shape: f32[3,128,128], index: 1, kind: input, shape index: {}]   ;;  %s517_s2 = inlined_call_operand.vmem [shape: f32[3,2,128], index: 2, kind: input, shape index: {}]   ;;  %s518_s3 = inlined_call_operand.vmem [shape: f32[8,128], index: 3, kind: output, shape index: {}]  }
   0x1 LB: > { %s463_s13 = sadd.s32 4294967295, %s433_s12   ;;  %p351_p0 = scmp.ge.s32.totalorder %s433_s12, 1  ;;  %s433_s12 = sphi %s457_s12, %s13_s12  }
   0x2   : > { %p108_p1 = scmp.lt.s32.totalorder %s433_s12, 4 }
   0x4   : > { %p109_p2 = pnand %p351_p0, %p108_p1 }
   0x5   : > { %p125_p3 = scmp.lt.s32.totalorder (!%p109_p2), %s463_s13, 2  ;;  %p354_p4 = scmp.ne.s32.totalorder (!%p109_p2), %s463_s13, 0 }
   0x6   : > { %112 = sbr.rel (%p109_p2) target bundleno = 315 (0x13b), region = 28 }
   0xb   : > { %s126_s14 = scalar_select %p125_p3, %s463_s13, 2 }
   0xc   : > { %133 = sbr.rel (%p354_p4) target bundleno = 22 (0x16), region = 32 }
   0xd   : > { %s360_s15 = sshll.u32 %s126_s14, 7 }
   0xe   : > { %s472_s18 = scalar_lea.vmem %s516_s1, %s360_s15 }
  0x11   : > { %v167_v0 = vld [vmem:[%s515_s0] sm:$0xff] }
  0x12   : > { %168 = vst [vmem:[%s518_s3] sm:$0xff] %v167_v0 }
  0x13   : > { %176 = vsyncadd [#allocation2], 128 }
  0x14   : > { %429 = dma.done.wait [#allocation2], 128 }
  0x15   : > { %430 = vsyncadd [#allocation2], 4294967168 }
  0x16 PF: > { %v196_v1 = vld [vmem:[%s472_s18 + $0x78] sm:$0xff]  ;;  %v435_v2 = vmov 0.0   ;;  %v195_v3 = vld [vmem:[%s472_s18 + $0x70] sm:$0xff]  ;;  %vm436_vm0 = vmmov 0   ;;  %v194_v4 = vld [vmem:[%s472_s18 + $0x68] sm:$0xff]  ;;  %v289_v38 = vlaneseq  ;;  %s355_s25 = sshll.u32 %s463_s13, 1 }
  0x17   : > { %378 = vmatprep.subr.mxu0 %v435_v2  ;;  %410 = vmatprep.mubr.msk.f32.mxu0 %vm436_vm0, %v435_v2  ;;  %v193_v5 = vld [vmem:[%s472_s18 + $0x60] sm:$0xff]  ;;  %v192_v6 = vld [vmem:[%s472_s18 + $0x58] sm:$0xff]  ;;  %v191_v7 = vld [vmem:[%s472_s18 + $0x50] sm:$0xff]  ;;  %s268_s28 = scalar_lea.vmem %s517_s2, %s355_s25  ;;  %p356_p5 = scmp.ge.s32.totalorder %s463_s13, 2 }
  0x18   : > { %379 = vmatpush3.msra.mxu0 %v196_v1  ;;  %v190_v8 = vld [vmem:[%s472_s18 + $0x48] sm:$0xff]  ;;  %v189_v9 = vld [vmem:[%s472_s18 + $0x40] sm:$0xff]  ;;  %v188_v10 = vld [vmem:[%s472_s18 + $0x38] sm:$0xff]  ;;  %v290_v39 = vshrl.u32 %v289_v38, 7 }
  0x19   : > { %380 = vmatprep.subr.mxu0 %v435_v2  ;;  %v187_v11 = vld [vmem:[%s472_s18 + $0x30] sm:$0xff]  ;;  %v186_v12 = vld [vmem:[%s472_s18 + $0x28] sm:$0xff]  ;;  %v185_v13 = vld [vmem:[%s472_s18 + $0x20] sm:$0xff] }
  0x1a   : > { %381 = vmatpush3.msra.mxu0 %v195_v3  ;;  %v184_v14 = vld [vmem:[%s472_s18 + $0x18] sm:$0xff]  ;;  %v183_v15 = vld [vmem:[%s472_s18 + $0x10] sm:$0xff]  ;;  %v182_v16 = vld [vmem:[%s472_s18 + $0x8] sm:$0xff]  ;;  %v291_v41 = vsub.s32 0, %v290_v39  ;;  %v296_v42 = vsub.s32 1, %v290_v39 }
  0x1b   : > { %382 = vmatprep.subr.mxu0 %v435_v2  ;;  %v181_v17 = vld [vmem:[%s472_s18] sm:$0xff] }
  0x1c   : > { %383 = vmatpush3.msra.mxu0 %v194_v4  ;;  %v180_v18 = vld [vmem:[%s518_s3] sm:$0xff] }
  0x1d   : > { %384 = vmatprep.subr.mxu0 %v435_v2  ;;  %v269_v40 = vld [vmem:[%s268_s28] sm:$0x3] }
  0x1e   : > { %385 = vmatpush3.msra.mxu0 %v193_v5  ;;  %v297_v46 = vrot.slane %v269_v40, %v296_v42 }
  0x1f   : > { %386 = vmatprep.subr.mxu0 %v435_v2 }
  0x20   : > { %387 = vmatpush3.msra.mxu0 %v192_v6 }
  0x21   : > { %388 = vmatprep.subr.mxu0 %v435_v2 }
  0x22   : > { %389 = vmatpush3.msra.mxu0 %v191_v7 }
  0x23   : > { %390 = vmatprep.subr.mxu0 %v435_v2 }
  0x24   : > { %391 = vmatpush3.msra.mxu0 %v190_v8 }
  0x25   : > { %392 = vmatprep.subr.mxu0 %v435_v2 }
  0x26   : > { %393 = vmatpush3.msra.mxu0 %v189_v9 }
  0x27   : > { %394 = vmatprep.subr.mxu0 %v435_v2 }
  0x28   : > { %395 = vmatpush3.msra.mxu0 %v188_v10 }
  0x29   : > { %396 = vmatprep.subr.mxu0 %v435_v2 }
  0x2a   : > { %397 = vmatpush3.msra.mxu0 %v187_v11 }
  0x2b   : > { %398 = vmatprep.subr.mxu0 %v435_v2 }
  0x2c   : > { %399 = vmatpush3.msra.mxu0 %v186_v12 }
  0x2d   : > { %400 = vmatprep.subr.mxu0 %v435_v2 }
  0x2e   : > { %401 = vmatpush3.msra.mxu0 %v185_v13 }
  0x2f   : > { %402 = vmatprep.subr.mxu0 %v435_v2 }
  0x30   : > { %403 = vmatpush3.msra.mxu0 %v184_v14 }
  0x31   : > { %404 = vmatprep.subr.mxu0 %v435_v2 }
  0x32   : > { %405 = vmatpush3.msra.mxu0 %v183_v15 }
  0x33   : > { %406 = vmatprep.subr.mxu0 %v435_v2 }
  0x34   : > { %407 = vmatpush3.msra.mxu0 %v182_v16 }
  0x35   : > { %408 = vmatprep.subr.mxu0 %v435_v2 }
  0x36   : > { %409 = vmatpush3.msra.mxu0 %v181_v17 }
  0x37   : > { %411 = vmatmul.mubr.f32.vlgmr.msra.gmra.mxu0 %v180_v18 }
  0xf7   : > { %v263_v19 = vpop.f32.mrf.mxu0 }
  0xf8   : > { %v270_v20 = vrot.slane %v263_v19, 4 }
  0xf9   : > { %v412_v21 = vpop.f32.mrf.mxu0 }
  0xfa   : > { %v271_v22 = vadd.f32 %v270_v20, %v263_v19 }
  0xfc   : > { %v272_v23 = vrot.slane %v271_v22, 2 }
  0xfe   : > { %v273_v24 = vadd.f32 %v272_v23, %v271_v22 }
 0x100   : > { %v274_v25 = vrot.slane %v273_v24, 1 }
 0x102   : > { %v275_v26 = vadd.f32 %v274_v25, %v273_v24 }
 0x104   : > { %v276_v27 = vmul.f32 0.125, %v275_v26 }
 0x106   : > { %v277_v28 = vsub.f32 %v263_v19, %v276_v27 }
 0x108   : > { %v278_v29 = vmul.f32 %v277_v28, %v277_v28 }
 0x10a   : > { %v279_v30 = vrot.slane %v278_v29, 4 }
 0x10c   : > { %v280_v31 = vadd.f32 %v279_v30, %v278_v29 }
 0x10e   : > { %v281_v32 = vrot.slane %v280_v31, 2 }
 0x110   : > { %v282_v33 = vadd.f32 %v281_v32, %v280_v31 }
 0x112   : > { %v283_v34 = vrot.slane %v282_v33, 1 }
 0x114   : > { %v284_v35 = vadd.f32 %v283_v34, %v282_v33 }
 0x116   : > { %v285_v36 = vmul.f32 0.125, %v284_v35 }
 0x118   : > { %v286_v37 = vadd.f32 1e-05, %v285_v36 }
 0x11a   : > { %423 = vrsqrt.f32 %v286_v37 }
 0x127   : > { %v424_v43 = vpop.eup %423 }
 0x128   : > { %v288_v44 = vmul.f32 %v424_v43, %v269_v40 }
 0x12a   : > { %v292_v45 = vrot.slane %v288_v44, %v291_v41  ;;  %302 = sbr.rel (%p356_p5) target bundleno = 307 (0x133), region = 71 }
 0x12c   : > { %v293_v47 = vmul.f32 %v292_v45, %v277_v28 }
 0x12e   : > { %v298_v48 = vadd.f32 %v297_v46, %v293_v47 }
 0x130   : > { %v303_v49 = vmax.f32 %v298_v48, 0.0 }
 0x132   : > { %304 = vst [vmem:[%s518_s3] sm:$0xff] %v303_v49 }
 0x133 PF: > { %p357_p6 = scmp.ne.s32.totalorder %s463_s13, 2 }
 0x135   : > { %308 = sbr.rel (%p357_p6) target bundleno = 315 (0x13b), region = 75 }
 0x13a   : > { %309 = vst [vmem:[%s518_s3] sm:$0xff] %v298_v48 }
 0x13b PF: > { %s13_s12 = sadd.s32 1, %s433_s12  }
 0x13c   : > { %p10_p7 = scmp.ge.s32.totalorder %s13_s12, 5  }
 0x13e   :  { %12 = sbr.rel (!%p10_p7) target bundleno = 1 (0x1), region = 110 }

</bundles_post_ra>
